<compile_context>
chip_gen: v7x
topology: tpu7x:2x2x1
jax: 0.10.0
libtpu: 0.0.40
codegen_flags: <defaults>
</compile_context>

<pallas_src>
import functools
import math

import jax
import jax.numpy as jnp
from jax.experimental import pallas as pl
from jax.experimental.pallas import tpu as pltpu

LOG_STD_MAX = 2.0
LOG_STD_MIN = -20.0
_HALF_LOG_2PI = 0.5 * math.log(2.0 * math.pi)
_LOG2 = math.log(2.0)


def _round_up(x, m):
    return ((x + m - 1) // m) * m


def _softplus(x):
    # Numerically stable softplus, f32; lowers to VPU max/abs + EUP exp/log.
    return jnp.maximum(x, 0.0) + jnp.log(1.0 + jnp.exp(-jnp.abs(x)))


def squashed_gaussian_actor_kernel(
        obs_ref, noise_ref,
        w1_ref, b1_ref, w2_ref, b2_ref,
        wh_ref, bh_ref,
        act_ref, logp_ref,
        *, act_limit, act_dim, compute_logprob):
    wd = w1_ref.dtype  # matmul operand dtype (bf16 by default); accumulation is f32

    # ---- MLP trunk: Linear -> ReLU -> Linear -> ReLU (bias add / ReLU in f32) ----
    h = jnp.dot(obs_ref[...], w1_ref[...],
                preferred_element_type=jnp.float32) + b1_ref[...]
    h = jnp.maximum(h, 0.0)
    h = jnp.dot(h.astype(wd), w2_ref[...],
                preferred_element_type=jnp.float32) + b2_ref[...]
    h = jnp.maximum(h, 0.0)

    # ---- Fused Gaussian heads: one matmul produces [mu | log_std] ----
    heads = jnp.dot(h.astype(wd), wh_ref[...],
                    preferred_element_type=jnp.float32) + bh_ref[...]
    mu = heads[:, :act_dim]
    log_std = jnp.clip(heads[:, act_dim:], LOG_STD_MIN, LOG_STD_MAX)
    std = jnp.exp(log_std)

    # ---- rsample (reparameterized): pi = mu + std * eps, eps supplied from outside ----
    eps = noise_ref[...]
    pi = mu + std * eps

    # ---- squash + scale ----
    act_ref[...] = (act_limit * jnp.tanh(pi)).astype(act_ref.dtype)

    # ---- log-prob: Normal(mu, std).log_prob(pi).sum(-1) with pi = mu + std*eps
    #      reduces to sum(-0.5*eps^2 - log_std - 0.5*log(2*pi)), then tanh correction. ----
    if compute_logprob:
        logp_gauss = jnp.sum(-0.5 * eps * eps - log_std - _HALF_LOG_2PI,
                             axis=-1, keepdims=True)
        corr = jnp.sum(2.0 * (_LOG2 - pi - _softplus(-2.0 * pi)),
                       axis=-1, keepdims=True)
        logp_ref[...] = (logp_gauss - corr).astype(logp_ref.dtype)
    else:
        logp_ref[...] = jnp.zeros_like(logp_ref)


def squashed_gaussian_actor_forward(obs, noise, params, *, act_limit,
                                    deterministic=False, with_logprob=True,
                                    matmul_dtype=jnp.bfloat16,
                                    max_tile_b=512):
    """obs: (B, obs_dim) f32, noise: (B, act_dim) f32 standard-normal samples.

    Returns (action, logp_pi) by default; only `action` if deterministic or
    with_logprob=False (matching the torch module's forward).
    """
    w1, b1, w2, b2, wmu, bmu, wls, bls = params
    B, obs_dim = obs.shape
    act_dim = wmu.shape[1]

    if deterministic:
        # rsample collapses to mu.
        noise = jnp.zeros((B, act_dim), jnp.float32)

    # Batch tiling: keep the sublane dim a multiple of 8; pad B up to the tile.
    tile_b = min(max_tile_b, _round_up(B, 8))
    b_pad = _round_up(B, tile_b)
    if b_pad != B:
        obs = jnp.pad(obs, ((0, b_pad - B), (0, 0)))
        noise = jnp.pad(noise, ((0, b_pad - B), (0, 0)))

    # Matmul operands in bf16 (f32 accumulation in-kernel); biases stay f32.
    obs = obs.astype(matmul_dtype)
    noise = noise.astype(jnp.float32)
    w1m, w2m = w1.astype(matmul_dtype), w2.astype(matmul_dtype)
    # Fuse the two heads: [wmu | wls] -> one (h2, 2*act_dim) matmul.
    whm = jnp.concatenate([wmu, wls], axis=1).astype(matmul_dtype)
    bh = jnp.concatenate([bmu, bls], axis=1).astype(jnp.float32)

    grid = (b_pad // tile_b,)
    need_logp = bool(with_logprob) and not deterministic

    def row_spec(ncol):
        return pl.BlockSpec((tile_b, ncol), lambda i: (i, 0))

    def const_spec(shape):
        # Constant block index -> weights/biases stay resident in VMEM across steps.
        return pl.BlockSpec(shape, lambda i: (0, 0))

    act, logp = pl.pallas_call(
        functools.partial(squashed_gaussian_actor_kernel,
                          act_limit=float(act_limit),
                          act_dim=int(act_dim),
                          compute_logprob=need_logp),
        grid=grid,
        in_specs=(
            row_spec(obs_dim),            # obs tile
            row_spec(act_dim),            # noise tile
            const_spec(w1m.shape), const_spec(b1.shape),
            const_spec(w2m.shape), const_spec(b2.shape),
            const_spec(whm.shape), const_spec(bh.shape),
        ),
        out_specs=(row_spec(act_dim), row_spec(1)),
        out_shape=(jax.ShapeDtypeStruct((b_pad, act_dim), jnp.float32),
                   jax.ShapeDtypeStruct((b_pad, 1), jnp.float32)),
        compiler_params=pltpu.CompilerParams(
            dimension_semantics=("parallel",)),   # split batch across v7x's 2 TCs
    )(obs, noise, w1m, b1, w2m, b2, whm, bh)

    act = act[:B]
    logp = jnp.squeeze(logp[:B], -1)
    if deterministic or not with_logprob:
        return act
    return act, logp


def init_actor_params(key, obs_dim, hidden_sizes, act_dim):
    """PyTorch-Linear-style init: U(-1/sqrt(fan_in), 1/sqrt(fan_in)).
    Weights stored (in_features, out_features); biases (1, out_features)."""
    def linear(key, fan_in, fan_out):
        kw, kb = jax.random.split(key)
        bound = 1.0 / (fan_in ** 0.5)
        w = jax.random.uniform(kw, (fan_in, fan_out), jnp.float32,
                               minval=-bound, maxval=bound)
        b = jax.random.uniform(kb, (1, fan_out), jnp.float32,
                               minval=-bound, maxval=bound)
        return w, b

    h1, h2 = hidden_sizes
    key, k1, k2, k3, k4 = jax.random.split(key, 5)
    w1, b1 = linear(k1, obs_dim, h1)
    w2, b2 = linear(k2, h1, h2)
    wmu, bmu = linear(k3, h2, act_dim)
    wls, bls = linear(k4, h2, act_dim)
    return (w1, b1, w2, b2, wmu, bmu, wls, bls)


def _reference_forward(obs, noise, params, act_limit, matmul_dtype=jnp.bfloat16):
    """Plain-JAX reference with identical math / casts as the kernel."""
    w1, b1, w2, b2, wmu, bmu, wls, bls = params
    md = matmul_dtype
    x = obs.astype(md)
    h = jnp.maximum(jnp.dot(x, w1.astype(md),
                            preferred_element_type=jnp.float32) + b1, 0.0)
    h = jnp.maximum(jnp.dot(h.astype(md), w2.astype(md),
                            preferred_element_type=jnp.float32) + b2, 0.0)
    h = h.astype(md)
    mu = jnp.dot(h, wmu.astype(md), preferred_element_type=jnp.float32) + bmu
    log_std = jnp.dot(h, wls.astype(md), preferred_element_type=jnp.float32) + bls
    log_std = jnp.clip(log_std, LOG_STD_MIN, LOG_STD_MAX)
    std = jnp.exp(log_std)
    pi = mu + std * noise
    logp = jnp.sum(-0.5 * noise * noise - log_std - _HALF_LOG_2PI, axis=-1)
    logp = logp - jnp.sum(2.0 * (_LOG2 - pi - jax.nn.softplus(-2.0 * pi)), axis=-1)
    act = act_limit * jnp.tanh(pi)
    return act, logp


if __name__ == "__main__":
    key = jax.random.PRNGKey(0)

    # Small shapes consistent with the module: obs_dim=16, act_dim=4, hidden=(32, 32).
    batch, obs_dim, act_dim, hidden_sizes = 8, 16, 4, (32, 32)
    act_limit = 1.5

    key, kobs, knoise, kparams = jax.random.split(key, 4)
    obs = jax.random.normal(kobs, (batch, obs_dim), dtype=jnp.float32)
    noise = jax.random.normal(knoise, (batch, act_dim), dtype=jnp.float32)
    params = init_actor_params(kparams, obs_dim, hidden_sizes, act_dim)

    action, logp_pi = squashed_gaussian_actor_forward(
        obs, noise, params, act_limit=act_limit)
    jax.block_until_ready((action, logp_pi))

    # Reference check (same math, same params, same operand casts).
    act_ref, logp_ref = _reference_forward(obs, noise, params, act_limit)
    assert action.shape == (batch, act_dim)
    assert logp_pi.shape == (batch,)
    assert jnp.allclose(action, act_ref, atol=1e-4, rtol=1e-4)
    assert jnp.allclose(logp_pi, logp_ref, atol=1e-4, rtol=1e-4)

    # Deterministic path: pi_action = act_limit * tanh(mu), single output.
    act_det = squashed_gaussian_actor_forward(
        obs, noise, params, act_limit=act_limit, deterministic=True)
    jax.block_until_ready(act_det)
    assert act_det.shape == (batch, act_dim)

    # with_logprob=False path: action only, log-prob math skipped in-kernel.
    act_nolp = squashed_gaussian_actor_forward(
        obs, noise, params, act_limit=act_limit, with_logprob=False)
    jax.block_until_ready(act_nolp)
    assert act_nolp.shape == (batch, act_dim)
    assert jnp.allclose(act_nolp, act_ref, atol=1e-4, rtol=1e-4)

    print("KERNEL_OK")
</pallas_src>

<mosaic_0001>
module attributes {stable_mosaic.version = 11 : i64} {
  func.func @squashed_gaussian_actor_kernel(%arg0: i32, %arg1: memref<8x16xbf16, #tpu.memory_space<vmem>>, %arg2: memref<8x4xf32, #tpu.memory_space<vmem>>, %arg3: memref<16x32xbf16, #tpu.memory_space<vmem>>, %arg4: memref<1x32xf32, #tpu.memory_space<vmem>>, %arg5: memref<32x32xbf16, #tpu.memory_space<vmem>>, %arg6: memref<1x32xf32, #tpu.memory_space<vmem>>, %arg7: memref<32x8xbf16, #tpu.memory_space<vmem>>, %arg8: memref<1x8xf32, #tpu.memory_space<vmem>>, %arg9: memref<8x4xf32, #tpu.memory_space<vmem>>, %arg10: memref<8x1xf32, #tpu.memory_space<vmem>>) attributes {dimension_semantics = [#tpu.dimension_semantics<parallel>], iteration_bounds = array<i64: 1>, scalar_prefetch = 0 : i64, scratch_operands = 0 : i64, tpu.core_type = #tpu.core_type<tc>, window_params = [{transform_indices = @transform_0, window_bounds = array<i64: 8, 16>}, {transform_indices = @transform_1, window_bounds = array<i64: 8, 4>}, {pipeline_mode = #tpu.pipeline_mode<synchronous>, transform_indices = @transform_2, window_bounds = array<i64: 16, 32>}, {pipeline_mode = #tpu.pipeline_mode<synchronous>, transform_indices = @transform_3, window_bounds = array<i64: 1, 32>}, {pipeline_mode = #tpu.pipeline_mode<synchronous>, transform_indices = @transform_4, window_bounds = array<i64: 32, 32>}, {pipeline_mode = #tpu.pipeline_mode<synchronous>, transform_indices = @transform_5, window_bounds = array<i64: 1, 32>}, {pipeline_mode = #tpu.pipeline_mode<synchronous>, transform_indices = @transform_6, window_bounds = array<i64: 32, 8>}, {pipeline_mode = #tpu.pipeline_mode<synchronous>, transform_indices = @transform_7, window_bounds = array<i64: 1, 8>}, {transform_indices = @transform_8, window_bounds = array<i64: 8, 4>}, {transform_indices = @transform_9, window_bounds = array<i64: 8, 1>}]} {
    %c0 = arith.constant 0 : index
    %c0_0 = arith.constant 0 : index
    %0 = vector.load %arg1[%c0, %c0_0] : memref<8x16xbf16, #tpu.memory_space<vmem>>, vector<8x16xbf16>
    %c0_1 = arith.constant 0 : index
    %c0_2 = arith.constant 0 : index
    %1 = vector.load %arg3[%c0_1, %c0_2] : memref<16x32xbf16, #tpu.memory_space<vmem>>, vector<16x32xbf16>
    %cst = arith.constant dense<0.000000e+00> : vector<8x32xf32>
    %2 = tpu.matmul %0, %1, %cst {dimension_numbers = #tpu.dot_dimension_numbers<[1], [0], [0], [1], [0, 0, 1, 1], [], []>} : vector<8x16xbf16>, vector<16x32xbf16>, vector<8x32xf32> -> vector<8x32xf32>
    %c0_3 = arith.constant 0 : index
    %c0_4 = arith.constant 0 : index
    %3 = vector.load %arg4[%c0_3, %c0_4] : memref<1x32xf32, #tpu.memory_space<vmem>>, vector<1x32xf32>
    %4 = vector.broadcast %3 : vector<1x32xf32> to vector<8x32xf32>
    %5 = arith.addf %2, %4 : vector<8x32xf32>
    %cst_5 = arith.constant 0.000000e+00 : f32
    %6 = vector.broadcast %cst_5 : f32 to vector<8x32xf32>
    %7 = arith.maximumf %5, %6 : vector<8x32xf32>
    %8 = arith.truncf %7 : vector<8x32xf32> to vector<8x32xbf16>
    %c0_6 = arith.constant 0 : index
    %c0_7 = arith.constant 0 : index
    %9 = vector.load %arg5[%c0_6, %c0_7] : memref<32x32xbf16, #tpu.memory_space<vmem>>, vector<32x32xbf16>
    %cst_8 = arith.constant dense<0.000000e+00> : vector<8x32xf32>
    %10 = tpu.matmul %8, %9, %cst_8 {dimension_numbers = #tpu.dot_dimension_numbers<[1], [0], [0], [1], [0, 0, 1, 1], [], []>} : vector<8x32xbf16>, vector<32x32xbf16>, vector<8x32xf32> -> vector<8x32xf32>
    %c0_9 = arith.constant 0 : index
    %c0_10 = arith.constant 0 : index
    %11 = vector.load %arg6[%c0_9, %c0_10] : memref<1x32xf32, #tpu.memory_space<vmem>>, vector<1x32xf32>
    %12 = vector.broadcast %11 : vector<1x32xf32> to vector<8x32xf32>
    %13 = arith.addf %10, %12 : vector<8x32xf32>
    %cst_11 = arith.constant 0.000000e+00 : f32
    %14 = vector.broadcast %cst_11 : f32 to vector<8x32xf32>
    %15 = arith.maximumf %13, %14 : vector<8x32xf32>
    %16 = arith.truncf %15 : vector<8x32xf32> to vector<8x32xbf16>
    %c0_12 = arith.constant 0 : index
    %c0_13 = arith.constant 0 : index
    %17 = vector.load %arg7[%c0_12, %c0_13] : memref<32x8xbf16, #tpu.memory_space<vmem>>, vector<32x8xbf16>
    %cst_14 = arith.constant dense<0.000000e+00> : vector<8x8xf32>
    %18 = tpu.matmul %16, %17, %cst_14 {dimension_numbers = #tpu.dot_dimension_numbers<[1], [0], [0], [1], [0, 0, 1, 1], [], []>} : vector<8x32xbf16>, vector<32x8xbf16>, vector<8x8xf32> -> vector<8x8xf32>
    %c0_15 = arith.constant 0 : index
    %c0_16 = arith.constant 0 : index
    %19 = vector.load %arg8[%c0_15, %c0_16] : memref<1x8xf32, #tpu.memory_space<vmem>>, vector<1x8xf32>
    %20 = vector.broadcast %19 : vector<1x8xf32> to vector<8x8xf32>
    %21 = arith.addf %18, %20 : vector<8x8xf32>
    %22 = vector.extract_strided_slice %21 {offsets = [0, 0], sizes = [8, 4], strides = [1, 1]} : vector<8x8xf32> to vector<8x4xf32>
    %23 = vector.extract_strided_slice %21 {offsets = [0, 4], sizes = [8, 4], strides = [1, 1]} : vector<8x8xf32> to vector<8x4xf32>
    %cst_17 = arith.constant -2.000000e+01 : f32
    %cst_18 = arith.constant 2.000000e+00 : f32
    %24 = vector.broadcast %cst_17 : f32 to vector<8x4xf32>
    %25 = arith.maximumf %24, %23 : vector<8x4xf32>
    %26 = vector.broadcast %cst_18 : f32 to vector<8x4xf32>
    %27 = arith.minimumf %26, %25 : vector<8x4xf32>
    %28 = math.exp %27 : vector<8x4xf32>
    %c0_19 = arith.constant 0 : index
    %c0_20 = arith.constant 0 : index
    %29 = vector.load %arg2[%c0_19, %c0_20] : memref<8x4xf32, #tpu.memory_space<vmem>>, vector<8x4xf32>
    %30 = arith.mulf %28, %29 : vector<8x4xf32>
    %31 = arith.addf %22, %30 : vector<8x4xf32>
    %32 = math.tanh %31 : vector<8x4xf32>
    %cst_21 = arith.constant 1.500000e+00 : f32
    %33 = vector.broadcast %cst_21 : f32 to vector<8x4xf32>
    %34 = arith.mulf %33, %32 : vector<8x4xf32>
    %c0_22 = arith.constant 0 : index
    %c0_23 = arith.constant 0 : index
    %35 = vector.load %arg9[%c0_22, %c0_23] : memref<8x4xf32, #tpu.memory_space<vmem>>, vector<8x4xf32>
    tpu.vector_store %arg9[%c0_22, %c0_23], %34 {strides = array<i32>} : memref<8x4xf32, #tpu.memory_space<vmem>>, vector<8x4xf32>,
    %cst_24 = arith.constant -5.000000e-01 : f32
    %36 = vector.broadcast %cst_24 : f32 to vector<8x4xf32>
    %37 = arith.mulf %36, %29 : vector<8x4xf32>
    %38 = arith.mulf %37, %29 : vector<8x4xf32>
    %39 = arith.subf %38, %27 : vector<8x4xf32>
    %cst_25 = arith.constant 0.918938517 : f32
    %40 = vector.broadcast %cst_25 : f32 to vector<8x4xf32>
    %41 = arith.subf %39, %40 : vector<8x4xf32>
    %cst_26 = arith.constant dense<0.000000e+00> : vector<8xf32>
    %42 = vector.multi_reduction <add>, %41, %cst_26 [1] : vector<8x4xf32> to vector<8xf32>
    %43 = vector.shape_cast %42 : vector<8xf32> to vector<8x1xf32>
    %cst_27 = arith.constant 0.693147182 : f32
    %44 = vector.broadcast %cst_27 : f32 to vector<8x4xf32>
    %45 = arith.subf %44, %31 : vector<8x4xf32>
    %cst_28 = arith.constant -2.000000e+00 : f32
    %46 = vector.broadcast %cst_28 : f32 to vector<8x4xf32>
    %47 = arith.mulf %46, %31 : vector<8x4xf32>
    %cst_29 = arith.constant 0.000000e+00 : f32
    %48 = vector.broadcast %cst_29 : f32 to vector<8x4xf32>
    %49 = arith.maximumf %47, %48 : vector<8x4xf32>
    %50 = math.absf %47 : vector<8x4xf32>
    %cst_30 = arith.constant 0.000000e+00 : f32
    %51 = vector.broadcast %cst_30 : f32 to vector<8x4xf32>
    %52 = arith.subf %51, %50 : vector<8x4xf32>
    %53 = math.exp %52 : vector<8x4xf32>
    %cst_31 = arith.constant 1.000000e+00 : f32
    %54 = vector.broadcast %cst_31 : f32 to vector<8x4xf32>
    %55 = arith.addf %54, %53 : vector<8x4xf32>
    %56 = math.log %55 : vector<8x4xf32>
    %57 = arith.addf %49, %56 : vector<8x4xf32>
    %58 = arith.subf %45, %57 : vector<8x4xf32>
    %cst_32 = arith.constant 2.000000e+00 : f32
    %59 = vector.broadcast %cst_32 : f32 to vector<8x4xf32>
    %60 = arith.mulf %59, %58 : vector<8x4xf32>
    %cst_33 = arith.constant dense<0.000000e+00> : vector<8xf32>
    %61 = vector.multi_reduction <add>, %60, %cst_33 [1] : vector<8x4xf32> to vector<8xf32>
    %62 = vector.shape_cast %61 : vector<8xf32> to vector<8x1xf32>
    %63 = arith.subf %43, %62 : vector<8x1xf32>
    %c0_34 = arith.constant 0 : index
    %c0_35 = arith.constant 0 : index
    %64 = vector.load %arg10[%c0_34, %c0_35] : memref<8x1xf32, #tpu.memory_space<vmem>>, vector<8x1xf32>
    tpu.vector_store %arg10[%c0_34, %c0_35], %63 {strides = array<i32>} : memref<8x1xf32, #tpu.memory_space<vmem>>, vector<8x1xf32>,
    return
  }
  func.func @transform_0(%arg0: i32) -> (i32, i32) {
    %c0_i32 = arith.constant 0 : i32
    %c0_i32_0 = arith.constant 0 : i32
    return %arg0, %c0_i32 : i32, i32
  }
  func.func @transform_1(%arg0: i32) -> (i32, i32) {
    %c0_i32 = arith.constant 0 : i32
    %c0_i32_0 = arith.constant 0 : i32
    return %arg0, %c0_i32 : i32, i32
  }
  func.func @transform_2(%arg0: i32) -> (i32, i32) {
    %c0_i32 = arith.constant 0 : i32
    %c0_i32_0 = arith.constant 0 : i32
    %c0_i32_1 = arith.constant 0 : i32
    return %c0_i32, %c0_i32_0 : i32, i32
  }
  func.func @transform_3(%arg0: i32) -> (i32, i32) {
    %c0_i32 = arith.constant 0 : i32
    %c0_i32_0 = arith.constant 0 : i32
    %c0_i32_1 = arith.constant 0 : i32
    return %c0_i32, %c0_i32_0 : i32, i32
  }
  func.func @transform_4(%arg0: i32) -> (i32, i32) {
    %c0_i32 = arith.constant 0 : i32
    %c0_i32_0 = arith.constant 0 : i32
    %c0_i32_1 = arith.constant 0 : i32
    return %c0_i32, %c0_i32_0 : i32, i32
  }
  func.func @transform_5(%arg0: i32) -> (i32, i32) {
    %c0_i32 = arith.constant 0 : i32
    %c0_i32_0 = arith.constant 0 : i32
    %c0_i32_1 = arith.constant 0 : i32
    return %c0_i32, %c0_i32_0 : i32, i32
  }
  func.func @transform_6(%arg0: i32) -> (i32, i32) {
    %c0_i32 = arith.constant 0 : i32
    %c0_i32_0 = arith.constant 0 : i32
    %c0_i32_1 = arith.constant 0 : i32
    return %c0_i32, %c0_i32_0 : i32, i32
  }
  func.func @transform_7(%arg0: i32) -> (i32, i32) {
    %c0_i32 = arith.constant 0 : i32
    %c0_i32_0 = arith.constant 0 : i32
    %c0_i32_1 = arith.constant 0 : i32
    return %c0_i32, %c0_i32_0 : i32, i32
  }
  func.func @transform_8(%arg0: i32) -> (i32, i32) {
    %c0_i32 = arith.constant 0 : i32
    %c0_i32_0 = arith.constant 0 : i32
    return %arg0, %c0_i32 : i32, i32
  }
  func.func @transform_9(%arg0: i32) -> (i32, i32) {
    %c0_i32 = arith.constant 0 : i32
    %c0_i32_0 = arith.constant 0 : i32
    return %arg0, %c0_i32 : i32, i32
  }
}

</mosaic_0001>

<bundles_post_ra>
// kernel: tpu_custom_call.1
= control target key start
LH: loop header
LB: loop body
LE: loop exit
PB: predicated region body
PF: predicated region fallthrough
CT: control target
= control target key end

     0   :  { %v345_v0 = vmov 0.0   ;;  %vm346_vm0 = vmmov 0   ;;  %vm48_vm1 = vcmask 130048   ;;  %vm117_vm2 = vcmask 261120   ;;  %s440_s2 = inlined_call_operand.vmem [shape: bf16[16,32], index: 2, kind: input, shape index: {}]   ;;  %s441_s0 = inlined_call_operand.vmem [shape: bf16[8,16], index: 0, kind: input, shape index: {}]   ;;  %s442_s4 = inlined_call_operand.vmem [shape: bf16[32,32], index: 4, kind: input, shape index: {}]   ;;  %s443_s6 = inlined_call_operand.vmem [shape: bf16[32,8], index: 6, kind: input, shape index: {}]   ;;  %s444_s3 = inlined_call_operand.vmem [shape: f32[1,32], index: 3, kind: input, shape index: {}]   ;;  %s445_s1 = inlined_call_operand.vmem [shape: f32[8,4], index: 1, kind: input, shape index: {}]   ;;  %s446_s5 = inlined_call_operand.vmem [shape: f32[1,32], index: 5, kind: input, shape index: {}]   ;;  %s447_s7 = inlined_call_operand.vmem [shape: f32[1,8], index: 7, kind: input, shape index: {}]   ;;  %s448_s8 = inlined_call_operand.vmem [shape: f32[8,4], index: 8, kind: output, shape index: {0}]   ;;  %s449_s9 = inlined_call_operand.vmem [shape: f32[8,1], index: 9, kind: output, shape index: {1}]  }
   0x1   :  { %306 = vmatprep.subr.bf16.mxu0 %v345_v0  ;;  %v332_v1 = vld [vmem:[%s440_s2] sm:$0xff]   ;;  %308 = vmatprep.mubr.msk.bf16.mxu0 %vm346_vm0, %v345_v0  ;;  %v334_v4 = vld [vmem:[%s442_s4 + $0x8] sm:$0xff]   ;;  %vm246_vm3 = vcmask 31744   ;;  %vm276_vm4 = vcmask 7168  }
   0x2   :  { %312 = vmatprep.subr.bf16.mxu1 %v345_v0  ;;  %316 = vmatprep.mubr.msk.bf16.mxu1 %vm346_vm0, %v345_v0  ;;  %v32_v2 = vld [vmem:[%s441_s0] sm:$0xf]  ;;  %v336_v14 = vld [vmem:[%s443_s6 + $0x8] sm:$0xff]  }
   0x3   :  { %307 = vmatpush3.bf16.msra.mxu0 %v332_v1  ;;  %v333_v3 = vld [vmem:[%s442_s4] sm:$0xff]  }
   0x4   :  { %320 = vmatprep.subr.bf16.mxu0 %v345_v0  ;;  %313 = vmatpush3.bf16.msra.mxu1 %v333_v3  ;;  %v335_v5 = vld [vmem:[%s443_s6] sm:$0xff]  }
   0x5   :  { %314 = vmatprep.subr.bf16.mxu1 %v345_v0  ;;  %v286_v6 = vld [vmem:[%s444_s3] ss:$0 sm:$0xff]  ;;  %s347_s3 = smov 4  }
   0x6   :  { %309 = vmatmul.mubr.msk.bf16.vlgmr.msra.gmra.mrb[0].mxu0 %vm48_vm1, %v32_v2  ;;  %v233_v15 = vld [vmem:[%s445_s1] sm:$0xff]  ;;  %s348_s1 = smov 124  }
   0x7   :  { %324 = vmatprep.mubr.msk.bf16.mxu0 %vm346_vm0, %v345_v0  ;;  %321 = vmatpush3.bf16.msra.mxu0 %v335_v5  ;;  %v289_v16 = vld [vmem:[%s446_s5] ss:$0 sm:$0xff]  ;;  %v248_v36 = vmul.f32 -0.5, %v233_v15 }
   0x8   :  { %315 = vmatpush3.bf16.msra.mxu1 %v334_v4  ;;  %322 = vmatprep.subr.bf16.mxu0 %v345_v0  ;;  %v293_v24 = vld [vmem:[%s447_s7] ss:$0 sm:$0xff] }
   0x9   :  { %235 = vrot.lane.b32.xlu0 %v233_v15, %s347_s3  ;;  %v249_v37 = vmul.f32 %v248_v36, %v233_v15 }
   0xb   :  { %323 = vmatpush3.bf16.msra.mxu0 %v336_v14 }
  0x7b   :  { %v236_v33 = vpop.permute.xlu0 %235 }
  0xd9   :  { %v86_v7 = vpop.f32.mrb[0].mxu0 }
  0xda   :  { %v87_v8 = vadd.f32 %v286_v6, %v86_v7  ;;  %v310_v9 = vpop.f32.mrb[1].mxu0 }
  0xdb   :  { %v89_v10 = vpop.f32.mrb[2].mxu0 }
  0xdc   :  { %v92_v11 = vmax.f32 %v87_v8, 0.0  ;;  %v311_v12 = vpop.f32.mrb[3].mxu0 }
  0xde   :  { %v93_v13 = vpack.c.bf16 %v92_v11, %v92_v11 }
  0xe0   :  { %317 = vmatmul.mubr.msk.bf16.vlgmr.msra.gmra.mrb[0].mxu1 %vm117_vm2, %v93_v13 }
 0x1b3   :  { %v155_v17 = vpop.f32.mrb[0].mxu1 }
 0x1b4   :  { %v156_v18 = vadd.f32 %v289_v16, %v155_v17  ;;  %v318_v19 = vpop.f32.mrb[1].mxu1 }
 0x1b5   :  { %v158_v20 = vpop.f32.mrb[2].mxu1 }
 0x1b6   :  { %v161_v21 = vmax.f32 %v156_v18, 0.0  ;;  %v319_v22 = vpop.f32.mrb[3].mxu1 }
 0x1b8   :  { %v162_v23 = vpack.c.bf16 %v161_v21, %v161_v21 }
 0x1ba   :  { %325 = vmatmul.mubr.msk.bf16.vlgmr.msra.gmra.mrb[4].mxu0 %vm117_vm2, %v162_v23 }
 0x28d   :  { %v223_v25 = vpop.f32.mrb[4].mxu0 }
 0x28e   :  { %v224_v26 = vadd.f32 %v293_v24, %v223_v25  ;;  %v326_v27 = vpop.f32.mrb[5].mxu0 }
 0x28f   :  { %v226_v28 = vpop.f32.mrb[6].mxu0 }
 0x290   :  { %v327_v29 = vpop.f32.mrb[7].mxu0  ;;  %v229_v30 = vmax.f32 %v224_v26, -20.0 }
 0x292   :  { %v230_v31 = vmin.f32 %v229_v30, 2.0 }
 0x294   :  { %251 = vrot.lane.b32.xlu1 %v230_v31, %s348_s1  ;;  %v231_v32 = vmul.f32 1.442695, %v230_v31 }
 0x296   :  { %337 = vpow2.f32 %v231_v32 }
 0x2a0   :  { %v338_v34 = vpop.eup %337 }
 0x2a1   :  { %v238_v35 = vmul.f32 %v338_v34, %v236_v33 }
 0x2a3   :  { %240 = vrot.lane.b32.xlu0 %v238_v35, %s348_s1 }
 0x306   :  { %v252_v38 = vpop.permute.xlu1 %251 }
 0x307   :  { %v254_v39 = vsub.f32 %v249_v37, %v252_v38 }
 0x309   :  { %v297_v40 = vadd.f32 -0.9189385, %v254_v39 }
 0x30b   :  { %v256_v41 = vsel %vm246_vm3, %v297_v40, 0.0 }
 0x30c   :  { %257 = vadd.xlane.f32.xlu1 %v256_v41 }
 0x315   :  { %v241_v42 = vpop.permute.xlu0 %240 }
 0x316   :  { %v243_v43 = vadd.f32 %v241_v42, %v224_v26 }
 0x318   :  { %339 = vtanh.f32 %v243_v43  ;;  %v260_v44 = vmul.f32 -2.0, %v243_v43  ;;  %v259_v55 = vsub.f32 0.6931472, %v243_v43 }
 0x31a   :  { %v262_v45 = vand.u32 2147483647, %v260_v44  ;;  %v261_v53 = vmax.f32 %v260_v44, 0.0 }
 0x31c   :  { %v263_v46 = vsub.f32 0.0, %v262_v45 }
 0x31e   :  { %v264_v47 = vmul.f32 1.442695, %v263_v46 }
 0x320   :  { %341 = vpow2.f32 %v264_v47 }
 0x322   :  { %v340_v48 = vpop.eup %339 }
 0x323   :  { %v245_v49 = vmul.f32 1.5, %v340_v48 }
 0x325   :  { %247 = vst.msk [vmem:[%s448_s8] sm:$0xff] %vm246_vm3, %v245_v49 }
 0x32a   :  { %v342_v50 = vpop.eup %341 }
 0x32b   :  { %v266_v51 = vadd.f32 1.0, %v342_v50 }
 0x32d   :  { %343 = vlog2.f32 %v266_v51 }
 0x337   :  { %v344_v52 = vpop.eup %343 }
 0x338   :  { %v268_v54 = vmul.f32 0.6931472, %v344_v52 }
 0x33a   :  { %v269_v56 = vadd.f32 %v268_v54, %v261_v53 }
 0x33c   :  { %v270_v57 = vsub.f32 %v259_v55, %v269_v56 }
 0x33e   :  { %v271_v58 = vmul.f32 2.0, %v270_v57 }
 0x340   :  { %v272_v59 = vsel %vm246_vm3, %v271_v58, 0.0 }
 0x341   :  { %273 = vadd.xlane.f32.xlu0 %v272_v59 }
 0x399   :  { %v258_v60 = vpop.xlane.xlu1 %257 }
 0x3ce   :  { %v274_v61 = vpop.xlane.xlu0 %273 }
 0x3cf   :  { %v275_v62 = vsub.f32 %v258_v60, %v274_v61 }
 0x3d1   :  { %277 = vst.msk [vmem:[%s449_s9] sm:$0xff] %vm276_vm4, %v275_v62 }

</bundles_post_ra>
